<compile_context>
chip_gen: v6e
topology: v6e:2x2x1
jax: 0.10.0
libtpu: 0.0.40
codegen_flags: <defaults>
</compile_context>

<pallas_src>
import numpy as np
import jax
import jax.numpy as jnp
from jax.experimental import pallas as pl
from jax.experimental.pallas import tpu as pltpu


def _round_up(x, m):
    return ((x + m - 1) // m) * m


def _make_time_encode_kernel(add_phase: bool):
    """Build one batch-tile TimeEncode kernel: tfeat = cos(ts * w [+ b]).

    ts_ref    : (TB, 1)  timestamps (f32)
    wb_ref    : (2, D)   row 0 = w (frequencies), row 1 = b (phases)
    tfeat_ref : (TB, D)  output time features
    """
    def kernel(ts_ref, wb_ref, tfeat_ref):
        ts = ts_ref[...]                      # (TB, 1)
        w = wb_ref[0:1, :]                    # (1, D)
        arg = ts * w
        if add_phase:                         # statically skipped when b == 0
            arg = arg + wb_ref[1:2, :]
        # f32 math; cast only at the store so a bf16 output dtype halves HBM
        # write bytes on the write-bound path (v5e/v6e).
        tfeat_ref[...] = jnp.cos(arg).astype(tfeat_ref.dtype)
    return kernel


def restarter_forward(node_feat_table, w, b, nids, ts, *,
                      tile_b=None, tfeat_dtype=jnp.float32):
    """Restarter feature computation.

    Returns (node_feats [B, D], time_feats [B, D], ts [B]) -- the
    Tuple[Tensor, Tensor, Tensor] the reference signature declares.
    """
    # TODO(synk): the reference Restarter.forward raises NotImplementedError; the
    # exact downstream combination of these tensors is defined only in subclasses.
    B = int(nids.shape[0])
    D = int(node_feat_table.shape[1])
    out_itemsize = int(jnp.dtype(tfeat_dtype).itemsize)

    # --- glue: gather raw node features by nid and return them directly. ---
    # TODO(synk): for tables that fit the scoped VMEM budget, fuse this gather into
    # the kernel (VMEM-resident table + scalar-prefetched nids) so the gather DMAs
    # overlap the cos compute; left to XLA's gather here for robustness.
    # Note: jnp.take clamps out-of-range nids silently (PyTorch would raise).
    node_feats = jnp.take(node_feat_table, nids, axis=0)        # (B, D)

    # --- batch tiling: big, balanced tiles; D is NOT padded (no de-pad pass). ---
    B_pad8 = _round_up(max(B, 1), 8)                  # sublane multiple

    if tile_b is None:
        # ~2 MiB of output per grid step amortizes the ~0.35 us per-step overhead.
        target_bytes = 2 * 1024 * 1024
        tile_b = max(8, target_bytes // max(1, D * out_itemsize))
        tile_b = min(int(tile_b), 4096)
    tb = min(int(tile_b), B_pad8)
    tb = max(8, (tb // 8) * 8)                        # multiple of 8 sublanes
    n_tiles = pl.cdiv(B_pad8, tb)
    if n_tiles == 1 and B_pad8 >= 16:
        # Guarantee >=2 grid steps so the "parallel" axis can shard across the
        # two TensorCores on v7x (harmless extra step on v5e/v6e).
        tb = _round_up(-(-B_pad8 // 2), 8)
        n_tiles = pl.cdiv(B_pad8, tb)
    B_pad = n_tiles * tb

    ts_f32 = ts.astype(jnp.float32)
    ts_col = jnp.pad(ts_f32, (0, B_pad - B)).reshape(B_pad, 1)   # (B_pad, 1)

    # Pack w/b into one (2, D) block (single small input stream).
    wb = jnp.stack([w.astype(jnp.float32).reshape(-1),
                    b.astype(jnp.float32).reshape(-1)], axis=0)  # (2, D)

    # Statically skip the phase add when b is a concrete all-zero vector
    # (classic TGN TimeEncode init) -- pure VALU saving, matters on v7x.
    add_phase = True
    try:
        if not np.any(np.asarray(b)):
            add_phase = False
    except Exception:
        pass  # b is traced -> keep the add

    cost = pl.CostEstimate(
        flops=int(2 * B_pad * D),
        transcendentals=int(B_pad * D),
        bytes_accessed=int(B_pad * D * out_itemsize + B_pad * 4 + 2 * D * 4),
    )

    tfeat = pl.pallas_call(
        _make_time_encode_kernel(add_phase),
        out_shape=jax.ShapeDtypeStruct((B_pad, D), tfeat_dtype),
        grid_spec=pltpu.PrefetchScalarGridSpec(
            num_scalar_prefetch=0,
            grid=(n_tiles,),
            in_specs=[
                pl.BlockSpec((tb, 1), lambda i: (i, 0)),     # ts column
                pl.BlockSpec((2, D), lambda i: (0, 0)),      # packed w/b (resident)
            ],
            # Last block dim equals the full array dim D: legal even when
            # D % 128 != 0 (masked vst on the final lane group), and it removes
            # the post-kernel [:, :D] de-pad HBM pass entirely.
            out_specs=pl.BlockSpec((tb, D), lambda i: (i, 0)),
        ),
        compiler_params=pltpu.CompilerParams(
            # Independent batch tiles -> shard across v7x's 2 TensorCores.
            dimension_semantics=("parallel",),
        ),
        cost_estimate=cost,
    )(ts_col, wb)

    # Only the leading (batch) dim is ever trimmed; contiguous slice, and only
    # when padding was actually added.
    if B_pad != B:
        tfeat = tfeat[:B]

    return node_feats, tfeat, ts_f32


def _reference(node_feat_table, w, b, nids, ts):
    nfeat = jnp.take(node_feat_table, nids, axis=0)
    tfeat = jnp.cos(ts.astype(jnp.float32)[:, None] * w[None, :] + b[None, :])
    return nfeat, tfeat, ts.astype(jnp.float32)


if __name__ == "__main__":
    key = jax.random.PRNGKey(0)
    k_feat, k_nid, k_ts, k_feat2, k_nid2, k_ts2, k_w2, k_b2 = jax.random.split(key, 8)

    # Tolerance note: Pallas (Mosaic EUP) cos and XLA cos are different f32
    # polynomial approximations; for |arg| up to a few hundred the difference is
    # up to ~2e-5 absolute. 2e-4 still catches any real layout/indexing bug.
    TF_RTOL, TF_ATOL = 5e-4, 2e-4

    # ---------------- case 1: small, lane-aligned shapes (b == 0 path) ----------------
    n_nodes, D, B = 32, 128, 8
    node_feat_table = jax.random.normal(k_feat, (n_nodes, D), dtype=jnp.float32)
    # Classic TGN TimeEncode init: w = 1 / 10**linspace(0, 9, dim), b = 0.
    w = jnp.asarray(1.0 / (10.0 ** np.linspace(0, 9, D)), dtype=jnp.float32)
    b = jnp.zeros((D,), dtype=jnp.float32)
    nids = jax.random.randint(k_nid, (B,), 0, n_nodes, dtype=jnp.int32)
    ts = jax.random.uniform(k_ts, (B,), minval=0.0, maxval=1000.0, dtype=jnp.float32)

    nfeat_out, tfeat_out, ts_out = restarter_forward(node_feat_table, w, b, nids, ts)
    jax.block_until_ready((nfeat_out, tfeat_out, ts_out))

    ref_nfeat, ref_tfeat, ref_ts = _reference(node_feat_table, w, b, nids, ts)
    np.testing.assert_allclose(np.asarray(nfeat_out), np.asarray(ref_nfeat), rtol=1e-6, atol=1e-6)
    np.testing.assert_allclose(np.asarray(tfeat_out), np.asarray(ref_tfeat), rtol=TF_RTOL, atol=TF_ATOL)
    np.testing.assert_allclose(np.asarray(ts_out), np.asarray(ref_ts), rtol=0, atol=0)

    # ------- case 2: ragged batch / non-128 feature dim (padding + 2-tile split) -------
    n_nodes2, D2, B2 = 17, 96, 20
    node_feat_table2 = jax.random.normal(k_feat2, (n_nodes2, D2), dtype=jnp.float32)
    w2 = jax.random.normal(k_w2, (D2,), dtype=jnp.float32)
    b2 = jax.random.normal(k_b2, (D2,), dtype=jnp.float32)
    nids2 = jax.random.randint(k_nid2, (B2,), 0, n_nodes2, dtype=jnp.int32)
    ts2 = jax.random.uniform(k_ts2, (B2,), minval=0.0, maxval=100.0, dtype=jnp.float32)

    nfeat2, tfeat2, ts2_out = restarter_forward(node_feat_table2, w2, b2, nids2, ts2)
    jax.block_until_ready((nfeat2, tfeat2, ts2_out))

    ref_nfeat2, ref_tfeat2, _ = _reference(node_feat_table2, w2, b2, nids2, ts2)
    np.testing.assert_allclose(np.asarray(nfeat2), np.asarray(ref_nfeat2), rtol=1e-6, atol=1e-6)
    np.testing.assert_allclose(np.asarray(tfeat2), np.asarray(ref_tfeat2), rtol=TF_RTOL, atol=TF_ATOL)

    # ------- case 3: bf16 output switch (halves HBM write bytes on v5e/v6e) -------
    _, tfeat_bf16, _ = restarter_forward(node_feat_table, w, b, nids, ts,
                                         tfeat_dtype=jnp.bfloat16)
    jax.block_until_ready(tfeat_bf16)
    np.testing.assert_allclose(np.asarray(tfeat_bf16, dtype=np.float32),
                               np.asarray(ref_tfeat), rtol=1e-2, atol=1e-2)

    print("KERNEL_OK")
</pallas_src>

<mosaic_0001>
module attributes {stable_mosaic.version = 11 : i64} {
  func.func @kernel(%arg0: i32, %arg1: memref<8x1xf32, #tpu.memory_space<vmem>>, %arg2: memref<2x128xf32, #tpu.memory_space<vmem>>, %arg3: memref<8x128xf32, #tpu.memory_space<vmem>>) attributes {dimension_semantics = [#tpu.dimension_semantics<parallel>], iteration_bounds = array<i64: 1>, scalar_prefetch = 0 : i64, scratch_operands = 0 : i64, tpu.core_type = #tpu.core_type<tc>, window_params = [{transform_indices = @transform_0, window_bounds = array<i64: 8, 1>}, {pipeline_mode = #tpu.pipeline_mode<synchronous>, transform_indices = @transform_1, window_bounds = array<i64: 2, 128>}, {transform_indices = @transform_2, window_bounds = array<i64: 8, 128>}]} {
    %c0 = arith.constant 0 : index
    %c0_0 = arith.constant 0 : index
    %0 = vector.load %arg1[%c0, %c0_0] : memref<8x1xf32, #tpu.memory_space<vmem>>, vector<8x1xf32>
    %c0_1 = arith.constant 0 : index
    %c0_2 = arith.constant 0 : index
    %1 = vector.load %arg2[%c0_1, %c0_2] : memref<2x128xf32, #tpu.memory_space<vmem>>, vector<1x128xf32>
    %2 = vector.broadcast %0 : vector<8x1xf32> to vector<8x128xf32>
    %3 = vector.broadcast %1 : vector<1x128xf32> to vector<8x128xf32>
    %4 = arith.mulf %2, %3 : vector<8x128xf32>
    %5 = math.cos %4 : vector<8x128xf32>
    %c0_3 = arith.constant 0 : index
    %c0_4 = arith.constant 0 : index
    %6 = vector.load %arg3[%c0_3, %c0_4] : memref<8x128xf32, #tpu.memory_space<vmem>>, vector<8x128xf32>
    tpu.vector_store %arg3[%c0_3, %c0_4], %5 {strides = array<i32>} : memref<8x128xf32, #tpu.memory_space<vmem>>, vector<8x128xf32>,
    return
  }
  func.func @transform_0(%arg0: i32) -> (i32, i32) {
    %c0_i32 = arith.constant 0 : i32
    %c0_i32_0 = arith.constant 0 : i32
    return %arg0, %c0_i32 : i32, i32
  }
  func.func @transform_1(%arg0: i32) -> (i32, i32) {
    %c0_i32 = arith.constant 0 : i32
    %c0_i32_0 = arith.constant 0 : i32
    %c0_i32_1 = arith.constant 0 : i32
    return %c0_i32, %c0_i32_0 : i32, i32
  }
  func.func @transform_2(%arg0: i32) -> (i32, i32) {
    %c0_i32 = arith.constant 0 : i32
    %c0_i32_0 = arith.constant 0 : i32
    return %arg0, %c0_i32 : i32, i32
  }
}

</mosaic_0001>

<bundles_post_ra>
// kernel: tpu_custom_call.1
= control target key start
LH: loop header
LB: loop body
LE: loop exit
PB: predicated region body
PF: predicated region fallthrough
CT: control target
= control target key end

     0   :  { %v186_v1 = vmov 0   ;;  %s239_s0 = inlined_call_operand.vmem [shape: f32[8,1], index: 0, kind: input, shape index: {}]   ;;  %s240_s1 = inlined_call_operand.vmem [shape: f32[2,128], index: 1, kind: input, shape index: {}]   ;;  %s241_s2 = inlined_call_operand.hbm [shape: f32[8,128], index: 2, kind: output, shape index: {}]  }
   0x1   :  { %v12_v0 = vld [vmem:[%s239_s0] sm:$0xff]  ;;  %159 = vset.pattern.permute.xlu0 %v186_v1 }
   0x2   :  { %7 = vsyncpa [#allocation3], 0  ;;  %16 = vperm.xlu0 %159, %v12_v0   ;;  %v142_v2 = vld [vmem:[%s240_s1] ss:$0 sm:$0xff]  ;;  %v187_v16 = vmov 2102212464  }
   0x3   :  { %v188_v18 = vmov 920167782   ;;  %v189_v22 = vmov 1326507024   ;;  %v190_v24 = vmov 683565275  }
   0x4   :  { %v191_v26 = vmov 2475754826   ;;  %v192_v29 = vmov 2131351028   ;;  %s193_s0 = smov [#allocation2]  }
   0x5   :  { %s134_s1 = sshll.u32 %s193_s0, 4  ;;  %s135_s1 = int_to_ptr.vmem [resolvable:$true] %s134_s1 }
   0x6   :  { %s164_s13 = scalar_lea.vmem %s135_s1, 128  ;;  %p169_p1 = scmp.lt.s32.totalorder %s135_s1, %s135_s1 }
   0x7   :  { %p165_p0 = scmp.ne.s32.totalorder %s135_s1, %s164_s13  ;;  %p170_p2 = scmp.lt.s32.totalorder %s164_s13, %s164_s13 }
   0x9   :  { %p171_p3 = por %p170_p2, %p169_p1 }
   0xb   :  { %p172_p4 = pnand %p171_p3, %p165_p0 }
  0x7d   :  { %v17_v3 = vpop.permute.xlu0 %16 }
  0x7e   :  { %v215_v4 = vmul.f32 %v142_v2, %v17_v3 }
  0x80   :  { %v27_v5 = vand.u32 2139095040, %v215_v4  ;;  %v24_v6 = vand.u32 2147483647, %v215_v4  ;;  %vm26_vm7 = vcmp.lt.s32.totalorder %v215_v4, 0  ;;  %vm116_vm12 = vweird.f32 %v215_v4 }
  0x82   :  { %v28_v7 = vshrl.u32 %v27_v5, 23  ;;  %v31_v9 = vand.u32 8388607, %v24_v6  ;;  %vm25_vm8 = vcmp.le.f32.partialorder %v24_v6, 0.7853982 }
  0x84   :  { %v143_v8 = vadd.s32 4294967169, %v28_v7  ;;  %v32_v12 = vor.u32 8388608, %v31_v9 }
  0x86   :  { %v34_v10 = vadd.s32 1, %v143_v8  ;;  %v72_v20 = vshll.u32 %v32_v12, 8 }
  0x88   :  { %vm35_vm0 = vcmp.gt.s32.totalorder %v34_v10, 0 }
  0x89   :  { %v36_v11 = vsel %vm35_vm0, %v34_v10, 0 }
  0x8a   :  { %v38_v13 = vand.u32 31, %v36_v11  ;;  %v37_v14 = vshrl.u32 %v36_v11, 5 }
  0x8c   :  { %v39_v15 = vsub.s32 32, %v38_v13  ;;  %v50_v17 = vshll.u32 %v187_v16, %v38_v13  ;;  %v53_v19 = vshll.u32 %v188_v18, %v38_v13  ;;  %v41_v25 = vshll.u32 %v190_v24, %v38_v13 }
  0x8d   :  { %v44_v28 = vshll.u32 %v191_v26, %v38_v13  ;;  %v47_v31 = vshll.u32 %v192_v29, %v38_v13  ;;  %vm59_vm1 = vcmp.lt.s32.totalorder %v37_v14, 4  ;;  %vm56_vm2 = vcmp.lt.s32.totalorder %v37_v14, 1 }
  0x8e   :  { %v51_v21 = vshrl.u32 %v188_v18, %v39_v15  ;;  %v54_v23 = vshrl.u32 %v189_v22, %v39_v15  ;;  %v42_v27 = vshrl.u32 %v191_v26, %v39_v15  ;;  %v45_v30 = vshrl.u32 %v192_v29, %v39_v15 }
  0x8f   :  { %v48_v32 = vshrl.u32 %v187_v16, %v39_v15  ;;  %v40_v36 = vshrl.u32 %v190_v24, %v39_v15  ;;  %vm57_vm3 = vcmp.lt.s32.totalorder %v37_v14, 2  ;;  %vm58_vm4 = vcmp.lt.s32.totalorder %v37_v14, 3 }
  0x90   :  { %v52_v33 = vor.u32 %v51_v21, %v50_v17  ;;  %v55_v34 = vor.u32 %v54_v23, %v53_v19  ;;  %v43_v35 = vor.u32 %v42_v27, %v41_v25  ;;  %v46_v37 = vor.u32 %v45_v30, %v44_v28 }
  0x91   :  { %v49_v38 = vor.u32 %v48_v32, %v47_v31 }
  0x92   :  { %v65_v39 = vsel %vm59_vm1, %v52_v33, 920167782  ;;  %v69_v40 = vsel %vm59_vm1, %v55_v34, 1326507024  ;;  %v64_v42 = vsel %vm56_vm2, %v43_v35, %v46_v37  ;;  %v60_v45 = vsel %vm56_vm2, %v40_v36, %v43_v35 }
  0x93   :  { %v61_v41 = vsel %vm59_vm1, %v49_v38, 2102212464  ;;  %v66_v43 = vsel %vm58_vm4, %v49_v38, %v65_v39  ;;  %v68_v44 = vsel %vm56_vm2, %v46_v37, %v49_v38  ;;  %v70_v48 = vsel %vm58_vm4, %v52_v33, %v69_v40 }
  0x94   :  { %v62_v46 = vsel %vm58_vm4, %v46_v37, %v61_v41  ;;  %v67_v47 = vsel %vm57_vm3, %v64_v42, %v66_v43  ;;  %v71_v49 = vsel %vm57_vm3, %v68_v44, %v70_v48 }
  0x95   :  { %v221_v50 = vmul.u32.u64.low %v72_v20, %v67_v47  ;;  %v222_v51 = vmul.u32.u64.high %v72_v20, %v67_v47, %v221_v50  ;;  %v224_v52 = vmul.u32.u64.low %v72_v20, %v71_v49  ;;  %v225_v53 = vmul.u32.u64.high %v72_v20, %v71_v49, %v224_v52 }
  0x96   :  { %v63_v54 = vsel %vm57_vm3, %v60_v45, %v62_v46 }
  0x97   :  { %v82_v55 = vadd.s32 1, %v222_v51  ;;  %v79_v56 = vmul.u32 %v72_v20, %v63_v54  ;;  %vm81_vm5 = vc.u32 %v225_v53, %v221_v50  ;;  %v80_v5 = vadd.s32 %v221_v50, %v225_v53 }
  0x99   :  { %v83_v57 = vsel %vm81_vm5, %v82_v55, %v222_v51 }
  0x9a   :  { %v84_v58 = vadd.s32 %v83_v57, %v79_v56 }
  0x9c   :  { %v85_v59 = vadd.s32 536870912, %v84_v58 }
  0x9e   :  { %v86_v60 = vshrl.u32 %v85_v59, 30 }
  0xa0   :  { %v87_v61 = vshll.u32 %v86_v60, 30  ;;  %v110_v21 = vsub.s32 4, %v86_v60 }
  0xa2   :  { %v88_v62 = vsub.s32 %v84_v58, %v87_v61  ;;  %v111_v22 = vsel %vm26_vm7, %v110_v21, %v86_v60 }
  0xa3   :  { %v113_v23 = vsel %vm25_vm8, 0, %v111_v22 }
  0xa4   :  { %v90_v63 = vsub.s32 0, %v88_v62  ;;  %v117_v24 = vand.u32 3, %v113_v23 }
  0xa6   :  { %v144_v0 = vmin.u32 %v90_v63, %v88_v62  ;;  %vm122_vm9 = vcmp.eq.s32.totalorder %v117_v24, 2  ;;  %vm119_vm10 = vcmp.eq.s32.totalorder %v117_v24, 0  ;;  %vm118_vm11 = vcmp.lt.s32.totalorder %v117_v24, 2 }
  0xa8   :  { %v92_v1 = vclz %v144_v0 }
  0xaa   :  { %v145_v2 = vadd.s32 4294967294, %v92_v1 }
  0xac   :  { %vm146_vm6 = vcmp.lt.s32.totalorder %v145_v2, 0 }
  0xad   :  { %v95_v3 = vsel %vm146_vm6, 0, %v145_v2 }
  0xae   :  { %v96_v7 = vsub.s32 32, %v95_v3  ;;  %v100_v8 = vsub.s32 4294967266, %v95_v3  ;;  %v97_v9 = vshll.u32 %v88_v62, %v95_v3 }
  0xb0   :  { %v98_v10 = vshrl.u32 %v80_v5, %v96_v7  ;;  %v101_v11 = vadd.s32 127, %v100_v8 }
  0xb2   :  { %v99_v12 = vor.u32 %v98_v10, %v97_v9  ;;  %v102_v13 = vshll.u32 %v101_v11, 23 }
  0xb4   :  { %v103_v14 = vor.u32 4788187, %v102_v13  ;;  %v106_v16 = vcvt.s32.f32 %v99_v12 }
  0xb6   :  { %v104_v15 = vand.u32 2147483647, %v103_v14 }
  0xb8   :  { %v107_v17 = vmul.f32 %v106_v16, %v104_v15 }
  0xba   :  { %v108_v18 = vxor.u32 2147483648, %v107_v17 }
  0xbc   :  { %v109_v19 = vsel %vm26_vm7, %v108_v18, %v107_v17 }
  0xbd   :  { %v112_v20 = vsel %vm25_vm8, %v215_v4, %v109_v19 }
  0xbe   :  { %160 = vcosq.f32 %v112_v20 }
  0xbf   :  { %162 = vsinq.f32 %v112_v20 }
  0xcb   :  { %v161_v25 = vpop.eup %160 }
  0xcc   :  { %v163_v26 = vpop.eup %162  ;;  %v123_v27 = vxor.u32 2147483648, %v161_v25 }
  0xcd   :  { %v120_v28 = vxor.u32 2147483648, %v163_v26 }
  0xce   :  { %v124_v29 = vsel %vm122_vm9, %v123_v27, %v163_v26 }
  0xcf   :  { %v121_v6 = vsel %vm119_vm10, %v161_v25, %v120_v28 }
  0xd0   :  { %v125_v30 = vsel %vm118_vm11, %v121_v6, %v124_v29 }
  0xd1   :  { %v126_v31 = vsel %vm116_vm12, nan, %v125_v30 }
  0xd2   :  { %127 = vst [vmem:[#allocation2] sm:$0xff] %v126_v31 }
  0xd3   :  { %175 = shalt.err (!%p172_p4)
}
  0xd4   :  { %137 = dma.vmem_to_hbm [thread:$0]  %s135_s1, 128, %s241_s2, [#allocation3]  }
  0xd5   :  { %184 = dma.done.wait [#allocation3], 128  }
  0xd6   :  { %185 = vsyncadd [#allocation3], 4294967168 }
  0xd7   :  { %141 = vsyncpa [#allocation3], 1 }

</bundles_post_ra>
